<compile_context>
chip_gen: v7x
topology: tpu7x:2x2x1
jax: 0.10.0
libtpu: 0.0.40
codegen_flags: <defaults>
</compile_context>

<pallas_src>
import jax
import jax.numpy as jnp
from jax.experimental import pallas as pl
from jax.experimental.pallas import tpu as pltpu

R1 = 4.0
R2 = 1.5
DIM_Y = 3


def torus_kernel(w_ref, x_ref, o_ref):
    # w_ref: (9,) f32 in SMEM  (row-major 3x3 lift, identity for output_dim==3)
    # x_ref: (2, TB) f32 in VMEM, lane-dense over batch
    # o_ref: (DIM_Y, TB) f32 in VMEM, lane-dense over batch
    theta = x_ref[0:1, :]                      # (1, TB)
    phi = x_ref[1:2, :]                        # (1, TB)

    cos_t = jnp.cos(theta)
    sin_t = jnp.sin(theta)
    cos_p = jnp.cos(phi)
    sin_p = jnp.sin(phi)

    ring = R1 + R2 * cos_t                     # (1, TB)
    px = ring * cos_p                          # (1, TB)
    py = ring * sin_p                          # (1, TB)
    pz = R2 * sin_t                            # (1, TB)

    # Linear lift via scalar FMAs (replaces concat + (B,3)@(3,3) MXU dot).
    for j in range(DIM_Y):
        o_ref[j:j + 1, :] = (px * w_ref[0 * DIM_Y + j]
                             + py * w_ref[1 * DIM_Y + j]
                             + pz * w_ref[2 * DIM_Y + j])


def wrapper_module_forward(x, w_proj, *, max_tile_b=32768):
    """WrapperModule.forward -> Torus(r1=4, r2=1.5, output_dim=3)(x).

    x      : (B, 2) float32 angles [theta, phi]
    w_proj : (3, DIM_Y) float32 lift matrix (identity when output_dim == 3)
    returns: (B, DIM_Y) float32
    """
    B = x.shape[0]

    # Lane-dense layout: batch on the last (lane) dimension.
    x_t = jnp.transpose(x).astype(jnp.float32)                 # (2, B)

    # Tile width: multiple of 128 lanes, capped so double-buffered in+out blocks
    # stay far below v7x's (smaller) VMEM budget.
    tb = min(max_tile_b, max(128, pl.next_power_of_2(B)))
    pad_b = pl.cdiv(B, tb) * tb
    if pad_b != B:
        x_t = jnp.pad(x_t, ((0, 0), (0, pad_b - B)))           # (2, pad_b)

    w_flat = jnp.reshape(w_proj.astype(jnp.float32), (-1,))    # (9,) row-major

    out_t = pl.pallas_call(
        torus_kernel,
        out_shape=jax.ShapeDtypeStruct((DIM_Y, pad_b), jnp.float32),
        grid=(pad_b // tb,),
        in_specs=[
            # 3x3 lift lives in SMEM; read as scalars on the scalar slot.
            pl.BlockSpec(memory_space=pltpu.MemorySpace.SMEM),
            # Angles: (2, tb) lane-dense blocks over the batch axis.
            pl.BlockSpec((2, tb), lambda i: (0, i)),
        ],
        out_specs=pl.BlockSpec((DIM_Y, tb), lambda i: (0, i)),
        compiler_params=pltpu.CompilerParams(
            dimension_semantics=("parallel",)),
        cost_estimate=pl.CostEstimate(
            flops=20 * pad_b,
            transcendentals=4 * pad_b,
            bytes_accessed=(2 + DIM_Y) * 4 * pad_b),
    )(w_flat, x_t)

    return jnp.transpose(out_t[:, :B])                          # (B, DIM_Y)


def _reference(x, w_proj):
    theta = x[:, 0:1]
    phi = x[:, 1:2]
    ring = R1 + R2 * jnp.cos(theta)
    pts = jnp.concatenate(
        [ring * jnp.cos(phi), ring * jnp.sin(phi), R2 * jnp.sin(theta)], axis=-1)
    return pts @ w_proj


if __name__ == "__main__":
    key = jax.random.PRNGKey(0)
    B = 8
    # angles in [0, 2*pi)
    x = jax.random.uniform(key, (B, 2), dtype=jnp.float32,
                           minval=0.0, maxval=2.0 * jnp.pi)
    # Deterministic parameter init: identity lift (output_dim == 3).
    # TODO(synk): if the real Torus uses a learned/random lift for output_dim > 3,
    # replace this identity with that matrix.
    w_proj = jnp.eye(3, DIM_Y, dtype=jnp.float32)

    out = wrapper_module_forward(x, w_proj)
    out = jax.block_until_ready(out)

    ref = _reference(x, w_proj)
    assert out.shape == (B, DIM_Y)
    assert jnp.allclose(out, ref, atol=1e-5, rtol=1e-5)
    print("KERNEL_OK")
</pallas_src>

<mosaic_0001>
module attributes {stable_mosaic.version = 11 : i64} {
  func.func @torus_kernel(%arg0: i32, %arg1: memref<9xf32, #tpu.memory_space<smem>>, %arg2: memref<2x128xf32, #tpu.memory_space<vmem>>, %arg3: memref<3x128xf32, #tpu.memory_space<vmem>>) attributes {dimension_semantics = [#tpu.dimension_semantics<parallel>], iteration_bounds = array<i64: 1>, scalar_prefetch = 0 : i64, scratch_operands = 0 : i64, tpu.core_type = #tpu.core_type<tc>, window_params = [{transform_indices = @transform_0, window_bounds = array<i64: 9>}, {transform_indices = @transform_1, window_bounds = array<i64: 2, 128>}, {transform_indices = @transform_2, window_bounds = array<i64: 3, 128>}]} {
    %c0 = arith.constant 0 : index
    %c0_0 = arith.constant 0 : index
    %0 = vector.load %arg2[%c0, %c0_0] : memref<2x128xf32, #tpu.memory_space<vmem>>, vector<1x128xf32>
    %c1 = arith.constant 1 : index
    %c0_1 = arith.constant 0 : index
    %1 = vector.load %arg2[%c1, %c0_1] : memref<2x128xf32, #tpu.memory_space<vmem>>, vector<1x128xf32>
    %2 = math.cos %0 : vector<1x128xf32>
    %3 = math.sin %0 : vector<1x128xf32>
    %4 = math.cos %1 : vector<1x128xf32>
    %5 = math.sin %1 : vector<1x128xf32>
    %cst = arith.constant 1.500000e+00 : f32
    %6 = vector.broadcast %cst : f32 to vector<1x128xf32>
    %7 = arith.mulf %6, %2 : vector<1x128xf32>
    %cst_2 = arith.constant 4.000000e+00 : f32
    %8 = vector.broadcast %cst_2 : f32 to vector<1x128xf32>
    %9 = arith.addf %8, %7 : vector<1x128xf32>
    %10 = arith.mulf %9, %4 : vector<1x128xf32>
    %11 = arith.mulf %9, %5 : vector<1x128xf32>
    %cst_3 = arith.constant 1.500000e+00 : f32
    %12 = vector.broadcast %cst_3 : f32 to vector<1x128xf32>
    %13 = arith.mulf %12, %3 : vector<1x128xf32>
    %c0_4 = arith.constant 0 : index
    %14 = memref.load %arg1[%c0_4] : memref<9xf32, #tpu.memory_space<smem>>
    %15 = vector.broadcast %14 : f32 to vector<1x128xf32>
    %16 = arith.mulf %10, %15 : vector<1x128xf32>
    %c3 = arith.constant 3 : index
    %17 = memref.load %arg1[%c3] : memref<9xf32, #tpu.memory_space<smem>>
    %18 = vector.broadcast %17 : f32 to vector<1x128xf32>
    %19 = arith.mulf %11, %18 : vector<1x128xf32>
    %20 = arith.addf %16, %19 : vector<1x128xf32>
    %c6 = arith.constant 6 : index
    %21 = memref.load %arg1[%c6] : memref<9xf32, #tpu.memory_space<smem>>
    %22 = vector.broadcast %21 : f32 to vector<1x128xf32>
    %23 = arith.mulf %13, %22 : vector<1x128xf32>
    %24 = arith.addf %20, %23 : vector<1x128xf32>
    %c0_5 = arith.constant 0 : index
    %c0_6 = arith.constant 0 : index
    %25 = vector.load %arg3[%c0_5, %c0_6] : memref<3x128xf32, #tpu.memory_space<vmem>>, vector<1x128xf32>
    tpu.vector_store %arg3[%c0_5, %c0_6], %24 {strides = array<i32>} : memref<3x128xf32, #tpu.memory_space<vmem>>, vector<1x128xf32>,
    %c1_7 = arith.constant 1 : index
    %26 = memref.load %arg1[%c1_7] : memref<9xf32, #tpu.memory_space<smem>>
    %27 = vector.broadcast %26 : f32 to vector<1x128xf32>
    %28 = arith.mulf %10, %27 : vector<1x128xf32>
    %c4 = arith.constant 4 : index
    %29 = memref.load %arg1[%c4] : memref<9xf32, #tpu.memory_space<smem>>
    %30 = vector.broadcast %29 : f32 to vector<1x128xf32>
    %31 = arith.mulf %11, %30 : vector<1x128xf32>
    %32 = arith.addf %28, %31 : vector<1x128xf32>
    %c7 = arith.constant 7 : index
    %33 = memref.load %arg1[%c7] : memref<9xf32, #tpu.memory_space<smem>>
    %34 = vector.broadcast %33 : f32 to vector<1x128xf32>
    %35 = arith.mulf %13, %34 : vector<1x128xf32>
    %36 = arith.addf %32, %35 : vector<1x128xf32>
    %c1_8 = arith.constant 1 : index
    %c0_9 = arith.constant 0 : index
    %37 = vector.load %arg3[%c1_8, %c0_9] : memref<3x128xf32, #tpu.memory_space<vmem>>, vector<1x128xf32>
    tpu.vector_store %arg3[%c1_8, %c0_9], %36 {strides = array<i32>} : memref<3x128xf32, #tpu.memory_space<vmem>>, vector<1x128xf32>,
    %c2 = arith.constant 2 : index
    %38 = memref.load %arg1[%c2] : memref<9xf32, #tpu.memory_space<smem>>
    %39 = vector.broadcast %38 : f32 to vector<1x128xf32>
    %40 = arith.mulf %10, %39 : vector<1x128xf32>
    %c5 = arith.constant 5 : index
    %41 = memref.load %arg1[%c5] : memref<9xf32, #tpu.memory_space<smem>>
    %42 = vector.broadcast %41 : f32 to vector<1x128xf32>
    %43 = arith.mulf %11, %42 : vector<1x128xf32>
    %44 = arith.addf %40, %43 : vector<1x128xf32>
    %c8 = arith.constant 8 : index
    %45 = memref.load %arg1[%c8] : memref<9xf32, #tpu.memory_space<smem>>
    %46 = vector.broadcast %45 : f32 to vector<1x128xf32>
    %47 = arith.mulf %13, %46 : vector<1x128xf32>
    %48 = arith.addf %44, %47 : vector<1x128xf32>
    %c2_10 = arith.constant 2 : index
    %c0_11 = arith.constant 0 : index
    %49 = vector.load %arg3[%c2_10, %c0_11] : memref<3x128xf32, #tpu.memory_space<vmem>>, vector<1x128xf32>
    tpu.vector_store %arg3[%c2_10, %c0_11], %48 {strides = array<i32>} : memref<3x128xf32, #tpu.memory_space<vmem>>, vector<1x128xf32>,
    return
  }
  func.func @transform_0(%arg0: i32) -> i32 {
    %c0_i32 = arith.constant 0 : i32
    %c0_i32_0 = arith.constant 0 : i32
    return %c0_i32 : i32
  }
  func.func @transform_1(%arg0: i32) -> (i32, i32) {
    %c0_i32 = arith.constant 0 : i32
    %c0_i32_0 = arith.constant 0 : i32
    return %c0_i32, %arg0 : i32, i32
  }
  func.func @transform_2(%arg0: i32) -> (i32, i32) {
    %c0_i32 = arith.constant 0 : i32
    %c0_i32_0 = arith.constant 0 : i32
    return %c0_i32, %arg0 : i32, i32
  }
}

</mosaic_0001>

<bundles_post_ra>
// kernel: tpu_custom_call.1
= control target key start
LH: loop header
LB: loop body
LE: loop exit
PB: predicated region body
PF: predicated region fallthrough
CT: control target
= control target key end

     0   :  { %7 = vsyncpa [#allocation4], 0  ;;  %s735_s0 = inlined_call_operand.hbm [shape: f32[9], index: 0, kind: input, shape index: {}]   ;;  %s736_s1 = inlined_call_operand.vmem [shape: f32[2,128], index: 1, kind: input, shape index: {}]   ;;  %s737_s2 = inlined_call_operand.hbm [shape: f32[3,128], index: 2, kind: output, shape index: {}]  }
   0x1   :  { %8 = vsyncpa [#allocation3], 0  ;;  %s543_s11 = scalar_lea.hbm %s735_s0, 16 }
   0x2   :  { %p544_p0 = scmp.ne.s32.totalorder %s735_s0, %s543_s11  ;;  %p547_p1 = scmp.lt.u32.totalorder %s543_s11, %s735_s0 }
   0x4   :  { %p549_p2 = pnand %p547_p1, %p544_p0 }
   0x6   :  { %552 = shalt.err (!%p549_p2)
}
   0x7   :  { %s579_s16 = smov [#allocation2]  }
   0x8   :  { %16 = dma.hbm_to_smem %s735_s0, 16, %s579_s16, [#allocation4]  }
   0x9   :  { %575 = dma.done.wait [#allocation4], 16  }
   0xa   :  { %576 = vsyncadd [#allocation4], 4294967280 }
   0xb   :  { %22 = sfence }
   0xc   :  { %v617_v0 = vld [vmem:[%s736_s1] sm:$0x1]  ;;  %v622_v1 = vld [vmem:[%s736_s1 + $0x1] sm:$0x1]  ;;  %v580_v21 = vmov 683565275  }
   0xd   :  { %v25_v2 = vand.u32 2147483647, %v617_v0  ;;  %v28_v3 = vand.u32 2139095040, %v617_v0  ;;  %v232_v6 = vand.u32 2147483647, %v622_v1  ;;  %v235_v7 = vand.u32 2139095040, %v622_v1 }
   0xe   :  { %v581_v23 = vmov 2475754826   ;;  %v582_v25 = vmov 2131351028   ;;  %v583_v27 = vmov 2102212464  }
   0xf   :  { %v29_v4 = vshrl.u32 %v28_v3, 23  ;;  %v32_v5 = vand.u32 8388607, %v25_v2  ;;  %v236_v9 = vshrl.u32 %v235_v7, 23  ;;  %v632_v13 = vand.u32 8388607, %v232_v6 }
  0x10   :  { %v584_v29 = vmov 920167782   ;;  %v585_v36 = vmov 1326507024   ;;  %vm27_vm14 = vcmp.lt.s32.totalorder %v617_v0, 0  ;;  %s687_s0 = sld [smem:[#allocation2]] }
  0x11   :  { %v495_v8 = vadd.s32 4294967169, %v29_v4  ;;  %v33_v11 = vor.u32 8388608, %v32_v5  ;;  %v503_v12 = vadd.s32 4294967169, %v236_v9  ;;  %v240_v19 = vor.u32 8388608, %v632_v13  ;;  %s689_s1 = sld [smem:[#allocation2 + $0x3]]  ;;  %s693_s23 = sld [smem:[#allocation2 + $0x6]] }
  0x12   :  { %vm26_vm15 = vcmp.le.f32.partialorder %v25_v2, 0.7853982  ;;  %s695_s24 = sld [smem:[#allocation2 + $0x1]]  ;;  %s697_s25 = sld [smem:[#allocation2 + $0x7]] }
  0x13   :  { %v35_v10 = vadd.s32 1, %v495_v8  ;;  %v242_v15 = vadd.s32 1, %v503_v12  ;;  %v634_v18 = vshll.u32 %v33_v11, 8  ;;  %s699_s26 = sld [smem:[#allocation2 + $0x4]]  ;;  %s701_s27 = sld [smem:[#allocation2 + $0x2]] }
  0x14   :  { %s703_s28 = sld [smem:[#allocation2 + $0x5]]  ;;  %s705_s29 = sld [smem:[#allocation2 + $0x8]] }
  0x15   :  { %vm36_vm0 = vcmp.gt.s32.totalorder %v35_v10, 0  ;;  %vm243_vm1 = vcmp.gt.s32.totalorder %v242_v15, 0  ;;  %s586_s30 = smov [#allocation5]  }
  0x16   :  { %v37_v14 = vsel %vm36_vm0, %v35_v10, 0  ;;  %v244_v41 = vsel %vm243_vm1, %v242_v15, 0  ;;  %vm234_vm0 = vcmp.lt.s32.totalorder %v622_v1, 0  ;;  %vm233_vm1 = vcmp.le.f32.partialorder %v232_v6, 0.7853982  ;;  %s486_s3 = sshll.u32 %s586_s30, 4  ;;  %s487_s3 = int_to_ptr.vmem [resolvable:$true] %s486_s3 }
  0x17   :  { %v38_v16 = vshrl.u32 %v37_v14, 5  ;;  %v39_v17 = vand.u32 31, %v37_v14  ;;  %v245_v44 = vshrl.u32 %v244_v41, 5  ;;  %v246_v45 = vand.u32 31, %v244_v41  ;;  %s553_s4 = scalar_lea.vmem %s487_s3, 64  ;;  %p558_p4 = scmp.lt.s32.totalorder %s487_s3, %s487_s3 }
  0x18   :  { %p554_p3 = scmp.ne.s32.totalorder %s487_s3, %s553_s4  ;;  %p559_p5 = scmp.lt.s32.totalorder %s553_s4, %s553_s4 }
  0x19   :  { %v40_v20 = vsub.s32 32, %v39_v17  ;;  %v42_v22 = vshll.u32 %v580_v21, %v39_v17  ;;  %v45_v24 = vshll.u32 %v581_v23, %v39_v17  ;;  %v48_v26 = vshll.u32 %v582_v25, %v39_v17 }
  0x1a   :  { %v51_v28 = vshll.u32 %v583_v27, %v39_v17  ;;  %v54_v30 = vshll.u32 %v584_v29, %v39_v17  ;;  %vm57_vm2 = vcmp.lt.s32.totalorder %v38_v16, 1  ;;  %vm58_vm3 = vcmp.lt.s32.totalorder %v38_v16, 2  ;;  %p560_p6 = por %p559_p5, %p558_p4 }
  0x1b   :  { %v41_v31 = vshrl.u32 %v580_v21, %v40_v20  ;;  %v43_v32 = vshrl.u32 %v581_v23, %v40_v20  ;;  %v46_v33 = vshrl.u32 %v582_v25, %v40_v20  ;;  %v49_v34 = vshrl.u32 %v583_v27, %v40_v20 }
  0x1c   :  { %v52_v35 = vshrl.u32 %v584_v29, %v40_v20  ;;  %v55_v37 = vshrl.u32 %v585_v36, %v40_v20  ;;  %vm59_vm4 = vcmp.lt.s32.totalorder %v38_v16, 3  ;;  %vm60_vm5 = vcmp.lt.s32.totalorder %v38_v16, 4  ;;  %p561_p7 = pnand %p560_p6, %p554_p3 }
  0x1d   :  { %v44_v38 = vor.u32 %v43_v32, %v42_v22  ;;  %v47_v39 = vor.u32 %v46_v33, %v45_v24  ;;  %v50_v40 = vor.u32 %v49_v34, %v48_v26  ;;  %v247_v53 = vsub.s32 32, %v246_v45 }
  0x1e   :  { %v53_v42 = vor.u32 %v52_v35, %v51_v28  ;;  %v56_v43 = vor.u32 %v55_v37, %v54_v30  ;;  %v249_v57 = vshll.u32 %v580_v21, %v246_v45  ;;  %v252_v7 = vshll.u32 %v581_v23, %v246_v45 }
  0x1f   :  { %v61_v46 = vsel %vm57_vm2, %v41_v31, %v44_v38  ;;  %v62_v47 = vsel %vm60_vm5, %v50_v40, 2102212464  ;;  %v65_v48 = vsel %vm57_vm2, %v44_v38, %v47_v39  ;;  %v69_v49 = vsel %vm57_vm2, %v47_v39, %v50_v40 }
  0x20   :  { %v63_v50 = vsel %vm59_vm4, %v47_v39, %v62_v47  ;;  %v66_v51 = vsel %vm60_vm5, %v53_v42, 920167782  ;;  %v70_v52 = vsel %vm60_vm5, %v56_v43, 1326507024  ;;  %v248_v61 = vshrl.u32 %v580_v21, %v247_v53 }
  0x21   :  { %v64_v54 = vsel %vm58_vm3, %v61_v46, %v63_v50  ;;  %v67_v55 = vsel %vm59_vm4, %v50_v40, %v66_v51  ;;  %v71_v56 = vsel %vm59_vm4, %v53_v42, %v70_v52  ;;  %v250_v5 = vshrl.u32 %v581_v23, %v247_v53 }
  0x22   :  { %v68_v58 = vsel %vm58_vm3, %v65_v48, %v67_v55  ;;  %v72_v59 = vsel %vm58_vm3, %v69_v49, %v71_v56  ;;  %v80_v60 = vmul.u32 %v634_v18, %v64_v54  ;;  %v253_v8 = vshrl.u32 %v582_v25, %v247_v53 }
  0x23   :  { %v649_v62 = vmul.u32.u64.low %v634_v18, %v72_v59  ;;  %v650_v63 = vmul.u32.u64.high %v634_v18, %v72_v59, %v649_v62  ;;  %v653_v3 = vmul.u32.u64.low %v634_v18, %v68_v58  ;;  %v654_v4 = vmul.u32.u64.high %v634_v18, %v68_v58, %v653_v3 }
  0x24   :  { %v255_v9 = vshll.u32 %v582_v25, %v246_v45  ;;  %v256_v10 = vshrl.u32 %v583_v27, %v247_v53  ;;  %v258_v11 = vshll.u32 %v583_v27, %v246_v45  ;;  %v259_v12 = vshrl.u32 %v584_v29, %v247_v53 }
  0x25   :  { %v261_v14 = vshll.u32 %v584_v29, %v246_v45  ;;  %v251_v15 = vor.u32 %v250_v5, %v249_v57  ;;  %v254_v16 = vor.u32 %v253_v8, %v252_v7  ;;  %v262_v17 = vshrl.u32 %v585_v36, %v247_v53 }
  0x26   :  { %vm264_vm6 = vcmp.lt.s32.totalorder %v245_v44, 1  ;;  %vm82_vm7 = vc.u32 %v650_v63, %v653_v3  ;;  %v83_v20 = vadd.s32 1, %v654_v4  ;;  %v257_v21 = vor.u32 %v256_v10, %v255_v9 }
  0x27   :  { %v280_v18 = vshll.u32 %v240_v19, 8  ;;  %v260_v22 = vor.u32 %v259_v12, %v258_v11  ;;  %v263_v23 = vor.u32 %v262_v17, %v261_v14  ;;  %vm265_vm8 = vcmp.lt.s32.totalorder %v245_v44, 2 }
  0x28   :  { %vm266_vm9 = vcmp.lt.s32.totalorder %v245_v44, 3  ;;  %v84_v24 = vsel %vm82_vm7, %v83_v20, %v654_v4  ;;  %vm267_vm10 = vcmp.lt.s32.totalorder %v245_v44, 4  ;;  %v268_v25 = vsel %vm264_vm6, %v248_v61, %v251_v15 }
  0x29   :  { %v272_v26 = vsel %vm264_vm6, %v251_v15, %v254_v16  ;;  %v85_v27 = vadd.s32 %v84_v24, %v80_v60  ;;  %v269_v28 = vsel %vm267_vm10, %v257_v21, 2102212464  ;;  %v273_v29 = vsel %vm267_vm10, %v260_v22, 920167782 }
  0x2a   :  { %v276_v30 = vsel %vm264_vm6, %v254_v16, %v257_v21  ;;  %v270_v31 = vsel %vm266_vm9, %v254_v16, %v269_v28  ;;  %v274_v32 = vsel %vm266_vm9, %v257_v21, %v273_v29  ;;  %v277_v13 = vsel %vm267_vm10, %v263_v23, 1326507024 }
  0x2b   :  { %v86_v19 = vadd.s32 536870912, %v85_v27  ;;  %v275_v33 = vsel %vm265_vm8, %v272_v26, %v274_v32  ;;  %v278_v34 = vsel %vm266_vm9, %v260_v22, %v277_v13  ;;  %v271_v35 = vsel %vm265_vm8, %v268_v25, %v270_v31 }
  0x2c   :  { %v279_v36 = vsel %vm265_vm8, %v276_v30, %v278_v34  ;;  %v667_v37 = vmul.u32.u64.low %v280_v18, %v275_v33  ;;  %v668_v38 = vmul.u32.u64.high %v280_v18, %v275_v33, %v667_v37  ;;  %v287_v43 = vmul.u32 %v280_v18, %v271_v35 }
  0x2d   :  { %v87_v39 = vshrl.u32 %v86_v19, 30  ;;  %v670_v40 = vmul.u32.u64.low %v280_v18, %v279_v36  ;;  %v671_v41 = vmul.u32.u64.high %v280_v18, %v279_v36, %v670_v40  ;;  %v81_v55 = vadd.s32 %v653_v3, %v650_v63 }
  0x2e   :  { %v290_v45 = vadd.s32 1, %v668_v38  ;;  %vm117_vm7 = vweird.f32 %v617_v0  ;;  %vm324_vm9 = vweird.f32 %v622_v1 }
  0x2f   :  { %v88_v42 = vshll.u32 %v87_v39, 30  ;;  %vm289_vm11 = vc.u32 %v671_v41, %v667_v37  ;;  %v288_v15 = vadd.s32 %v667_v37, %v671_v41  ;;  %v111_v18 = vsub.s32 4, %v87_v39 }
  0x30   :  { %v291_v47 = vsel %vm289_vm11, %v290_v45, %v668_v38 }
  0x31   :  { %v89_v46 = vsub.s32 %v85_v27, %v88_v42  ;;  %v292_v49 = vadd.s32 %v291_v47, %v287_v43  ;;  %v112_v28 = vsel %vm27_vm14, %v111_v18, %v87_v39 }
  0x32   :  { %v114_v31 = vsel %vm26_vm15, 0, %v112_v28 }
  0x33   :  { %v91_v48 = vsub.s32 0, %v89_v46  ;;  %v293_v50 = vadd.s32 536870912, %v292_v49  ;;  %v221_v19 = vadd.s32 3, %v114_v31  ;;  %v118_v2 = vand.u32 3, %v114_v31 }
  0x35   :  { %v496_v44 = vmin.u32 %v91_v48, %v89_v46  ;;  %v294_v52 = vshrl.u32 %v293_v50, 30  ;;  %v222_v36 = vand.u32 3, %v221_v19  ;;  %vm123_vm2 = vcmp.eq.s32.totalorder %v118_v2, 2 }
  0x36   :  { %vm120_vm3 = vcmp.eq.s32.totalorder %v118_v2, 0  ;;  %vm119_vm4 = vcmp.lt.s32.totalorder %v118_v2, 2 }
  0x37   :  { %v93_v51 = vclz %v496_v44  ;;  %v295_v54 = vshll.u32 %v294_v52, 30  ;;  %v318_v13 = vsub.s32 4, %v294_v52  ;;  %vm224_vm5 = vcmp.eq.s32.totalorder %v222_v36, 0 }
  0x38   :  { %vm227_vm6 = vcmp.eq.s32.totalorder %v222_v36, 2  ;;  %vm223_vm8 = vcmp.lt.s32.totalorder %v222_v36, 2 }
  0x39   :  { %v497_v53 = vadd.s32 4294967294, %v93_v51  ;;  %v296_v57 = vsub.s32 %v292_v49, %v295_v54  ;;  %v319_v35 = vsel %vm234_vm0, %v318_v13, %v294_v52 }
  0x3a   :  { %v321_v40 = vsel %vm233_vm1, 0, %v319_v35 }
  0x3b   :  { %vm498_vm12 = vcmp.lt.s32.totalorder %v497_v53, 0  ;;  %v298_v61 = vsub.s32 0, %v296_v57  ;;  %v428_v6 = vadd.s32 3, %v321_v40  ;;  %v325_v50 = vand.u32 3, %v321_v40 }
  0x3c   :  { %v96_v56 = vsel %vm498_vm12, 0, %v497_v53 }
  0x3d   :  { %v97_v58 = vsub.s32 32, %v96_v56  ;;  %v98_v59 = vshll.u32 %v89_v46, %v96_v56  ;;  %v101_v60 = vsub.s32 4294967266, %v96_v56  ;;  %v504_v5 = vmin.u32 %v298_v61, %v296_v57 }
  0x3e   :  { %v429_v51 = vand.u32 3, %v428_v6  ;;  %vm330_vm10 = vcmp.eq.s32.totalorder %v325_v50, 2  ;;  %vm327_vm12 = vcmp.eq.s32.totalorder %v325_v50, 0 }
  0x3f   :  { %v99_v62 = vshrl.u32 %v81_v55, %v97_v58  ;;  %v102_v4 = vadd.s32 127, %v101_v60  ;;  %v300_v9 = vclz %v504_v5 }
  0x40   :  { %vm434_vm11 = vcmp.eq.s32.totalorder %v429_v51, 2 }
  0x41   :  { %v100_v7 = vor.u32 %v99_v62, %v98_v59  ;;  %v103_v8 = vshll.u32 %v102_v4, 23  ;;  %v505_v12 = vadd.s32 4294967294, %v300_v9  ;;  %v445_v59 = vstv %s687_s0 }
  0x42   :  { %v448_v4 = vstv %s689_s1 }
  0x43   :  { %v104_v10 = vor.u32 4788187, %v103_v8  ;;  %v107_v11 = vcvt.s32.f32 %v100_v7  ;;  %vm506_vm13 = vcmp.lt.s32.totalorder %v505_v12, 0  ;;  %v452_v8 = vstv %s693_s23 }
  0x44   :  { %v303_v3 = vsel %vm506_vm13, 0, %v505_v12  ;;  %vm431_vm13 = vcmp.eq.s32.totalorder %v429_v51, 0  ;;  %v464_v12 = vstv %s697_s25 }
  0x45   :  { %v105_v14 = vand.u32 2147483647, %v104_v10  ;;  %v304_v16 = vsub.s32 32, %v303_v3  ;;  %v305_v17 = vshll.u32 %v296_v57, %v303_v3  ;;  %v308_v20 = vsub.s32 4294967266, %v303_v3 }
  0x46   :  { %v469_v3 = vstv %s701_s27 }
  0x47   :  { %v108_v63 = vmul.f32 %v107_v11, %v105_v14  ;;  %v306_v22 = vshrl.u32 %v288_v15, %v304_v16  ;;  %v309_v23 = vadd.s32 127, %v308_v20  ;;  %v457_v11 = vstv %s695_s24 }
  0x48   :  { %v472_v20 = vstv %s703_s28 }
  0x49   :  { %v109_v21 = vxor.u32 2147483648, %v108_v63  ;;  %v307_v26 = vor.u32 %v306_v22, %v305_v17  ;;  %v310_v27 = vshll.u32 %v309_v23, 23 }
  0x4b   :  { %v110_v24 = vsel %vm27_vm14, %v109_v21, %v108_v63  ;;  %v311_v29 = vor.u32 4788187, %v310_v27  ;;  %v314_v30 = vcvt.s32.f32 %v307_v26  ;;  %vm326_vm14 = vcmp.lt.s32.totalorder %v325_v50, 2 }
  0x4c   :  { %v113_v25 = vsel %vm26_vm15, %v617_v0, %v110_v24  ;;  %vm430_vm15 = vcmp.lt.s32.totalorder %v429_v51, 2  ;;  %v460_v63 = vstv %s699_s26  ;;  %v476_v21 = vstv %s705_s29 }
  0x4d   :  { %535 = vcosq.f32 %v113_v25  ;;  %v312_v32 = vand.u32 2147483647, %v311_v29 }
  0x4e   :  { %537 = vsinq.f32 %v113_v25 }
  0x4f   :  { %v315_v33 = vmul.f32 %v314_v30, %v312_v32 }
  0x51   :  { %v316_v34 = vxor.u32 2147483648, %v315_v33 }
  0x53   :  { %v317_v37 = vsel %vm234_vm0, %v316_v34, %v315_v33 }
  0x54   :  { %v320_v39 = vsel %vm233_vm1, %v622_v1, %v317_v37 }
  0x55   :  { %539 = vcosq.f32 %v320_v39 }
  0x56   :  { %541 = vsinq.f32 %v320_v39 }
  0x57   :  { %v536_v38 = vpop.eup %535 }
  0x58   :  { %v538_v41 = vpop.eup %537  ;;  %v124_v42 = vxor.u32 2147483648, %v536_v38 }
  0x59   :  { %v121_v43 = vxor.u32 2147483648, %v538_v41 }
  0x5a   :  { %v125_v45 = vsel %vm123_vm2, %v124_v42, %v538_v41  ;;  %v229_v49 = vsel %vm227_vm6, %v124_v42, %v538_v41 }
  0x5b   :  { %v122_v46 = vsel %vm120_vm3, %v536_v38, %v121_v43  ;;  %v226_v48 = vsel %vm224_vm5, %v536_v38, %v121_v43 }
  0x5c   :  { %v126_v47 = vsel %vm119_vm4, %v122_v46, %v125_v45  ;;  %v230_v52 = vsel %vm223_vm8, %v226_v48, %v229_v49 }
  0x5d   :  { %v127_v44 = vsel %vm117_vm7, nan, %v126_v47  ;;  %v231_v56 = vsel %vm117_vm7, nan, %v230_v52 }
  0x5e   :  { %v439_v53 = vmul.f32 1.5, %v127_v44  ;;  %v443_v7 = vmul.f32 1.5, %v231_v56 }
  0x5f   :  { %v540_v54 = vpop.eup %539 }
  0x60   :  { %v542_v55 = vpop.eup %541  ;;  %v331_v57 = vxor.u32 2147483648, %v540_v54  ;;  %v440_v62 = vadd.f32 4.0, %v439_v53  ;;  %v453_v18 = vmul.f32 %v452_v8, %v443_v7  ;;  %v465_v22 = vmul.f32 %v464_v12, %v443_v7 }
  0x61   :  { %v328_v58 = vxor.u32 2147483648, %v542_v55  ;;  %v477_v29 = vmul.f32 %v476_v21, %v443_v7 }
  0x62   :  { %v332_v60 = vsel %vm330_vm10, %v331_v57, %v542_v55  ;;  %v436_v61 = vsel %vm434_vm11, %v331_v57, %v542_v55 }
  0x63   :  { %v329_v0 = vsel %vm327_vm12, %v540_v54, %v328_v58  ;;  %v433_v5 = vsel %vm431_vm13, %v540_v54, %v328_v58 }
  0x64   :  { %v333_v9 = vsel %vm326_vm14, %v329_v0, %v332_v60  ;;  %v437_v10 = vsel %vm430_vm15, %v433_v5, %v436_v61 }
  0x65   :  { %v334_v14 = vsel %vm324_vm9, nan, %v333_v9  ;;  %v438_v15 = vsel %vm324_vm9, nan, %v437_v10 }
  0x66   :  { %v441_v16 = vmul.f32 %v440_v62, %v334_v14  ;;  %v442_v17 = vmul.f32 %v440_v62, %v438_v15 }
  0x68   :  { %v446_v23 = vmul.f32 %v445_v59, %v441_v16  ;;  %v449_v24 = vmul.f32 %v448_v4, %v442_v17  ;;  %v458_v25 = vmul.f32 %v457_v11, %v441_v16  ;;  %v461_v26 = vmul.f32 %v460_v63, %v442_v17 }
  0x69   :  { %v470_v27 = vmul.f32 %v469_v3, %v441_v16  ;;  %v473_v28 = vmul.f32 %v472_v20, %v442_v17 }
  0x6a   :  { %v450_v30 = vadd.f32 %v449_v24, %v446_v23  ;;  %v462_v31 = vadd.f32 %v461_v26, %v458_v25 }
  0x6b   :  { %v474_v1 = vadd.f32 %v473_v28, %v470_v27 }
  0x6c   :  { %v454_v32 = vadd.f32 %v453_v18, %v450_v30  ;;  %v466_v13 = vadd.f32 %v465_v22, %v462_v31 }
  0x6d   :  { %v478_v19 = vadd.f32 %v477_v29, %v474_v1 }
  0x6e   :  { %455 = vst [vmem:[#allocation5] sm:$0x1] %v454_v32  ;;  %467 = vst [vmem:[#allocation5 + $0x1] sm:$0x1] %v466_v13 }
  0x6f   :  { %479 = vst [vmem:[#allocation5 + $0x2] sm:$0x1] %v478_v19 }
  0x70   :  { %564 = shalt.err (!%p561_p7)
}
  0x71   :  { %s565_s7 = scalar_lea.hbm %s737_s2, 64 }
  0x72   :  { %p566_p8 = scmp.ne.s32.totalorder %s737_s2, %s565_s7  ;;  %p569_p9 = scmp.lt.u32.totalorder %s565_s7, %s737_s2 }
  0x74   :  { %p571_p10 = pnand %p569_p9, %p566_p8 }
  0x76   :  { %574 = shalt.err (!%p571_p10)
}
  0x77   :  { %489 = dma.vmem_to_hbm [thread:$0]  %s487_s3, 64, %s737_s2, [#allocation3]  }
  0x78   :  { %577 = dma.done.wait [#allocation3], 64  }
  0x79   :  { %578 = vsyncadd [#allocation3], 4294967232 }
  0x7a   :  { %493 = vsyncpa [#allocation3], 1 }
  0x7b   :  { %494 = vsyncpa [#allocation4], 1 }

</bundles_post_ra>
